<compile_context>
chip_gen: v6e
topology: v6e:2x2x1
jax: 0.10.0
libtpu: 0.0.40
codegen_flags: <defaults>
</compile_context>

<pallas_src>
import functools

import jax
import jax.numpy as jnp
from jax.experimental import pallas as pl
from jax.experimental.pallas import tpu as pltpu

KH = 3  # 3x3 conv, padding=1 (SAME)


# --------------------------------------------------------------------------- #
# Kernel: one fat matmul (+ fused LeakyReLU) per grid step.
# --------------------------------------------------------------------------- #
def _set_conv_kernel(x_ref, b_ref, o_ref, *, negative_slope):
    # x_ref : (R, K)       R output rows, K = 3*(w+2)*c_in folded taps
    # b_ref : (K, w*c_out) banded weights (resident across grid steps)
    # o_ref : (R, w*c_out) lane-dense output rows
    y = jnp.dot(x_ref[...], b_ref[...], preferred_element_type=jnp.float32)
    if negative_slope is not None:          # fused LeakyReLU (conv_block stage)
        y = jnp.where(y >= 0, y, negative_slope * y)
    o_ref[...] = y.astype(o_ref.dtype)


# --------------------------------------------------------------------------- #
# Weight banding: fold the (kh, kw) taps and c_in into the MXU K dimension.
# B[kh*(w+2)*c_in + wi*c_in + ci, wo*c_out + co] = W[co, ci, kh, wi-wo]
#                                                  if 0 <= wi-wo <= 2 else 0
# --------------------------------------------------------------------------- #
def _band_weights(weight, w, c_in, c_out, dtype):
    wk = jnp.transpose(weight, (2, 3, 1, 0))          # [3, 3, c_in, c_out]
    wi = jnp.arange(w + 2)[:, None]                   # padded input col
    wo = jnp.arange(w)[None, :]                       # output col
    kw = wi - wo                                      # [w+2, w]
    valid = (kw >= 0) & (kw <= 2)
    b = wk[:, jnp.clip(kw, 0, 2)]                     # [3, w+2, w, c_in, c_out]
    b = b * valid[None, :, :, None, None]
    b = jnp.transpose(b, (0, 1, 3, 2, 4))             # [3, w+2, c_in, w, c_out]
    return b.reshape(KH * (w + 2) * c_in, w * c_out).astype(dtype)


# --------------------------------------------------------------------------- #
# Row-block selection: biggest legal block within a VMEM budget while keeping
# >= 2 grid steps (megacore) and an 8-aligned sublane extent.
# --------------------------------------------------------------------------- #
def _pick_block_rows(num_rows, k_dim, lout, in_bytes,
                     vmem_budget_bytes=12 << 20, min_grid_steps=2):
    # double-buffered input + double-buffered f32 output, per row
    per_row = 2 * in_bytes * max(k_dim, 128) + 2 * 4 * max(lout, 128)
    cap = max(8, vmem_budget_bytes // per_row)
    divs = [r for r in range(8, num_rows + 1, 8) if num_rows % r == 0]
    if not divs:
        return num_rows                                # full extent is always legal
    fit = [r for r in divs if r <= cap] or [divs[0]]
    multi = [r for r in fit if num_rows // r >= min_grid_steps]
    return max(multi) if multi else max(fit)


# --------------------------------------------------------------------------- #
# SetBlockWrapper(Conv2d(c_in, c_out, 3, 1, 1, bias=False) [+ LeakyReLU])
# --------------------------------------------------------------------------- #
@functools.partial(jax.jit, static_argnames=("negative_slope", "compute_dtype"))
def set_block_conv2d(x, weight, *, negative_slope=None, compute_dtype=jnp.float32):
    """x: [n, c_in, s, h, w] f32; weight: [c_out, c_in, 3, 3] f32 (OIHW).
    Returns [n, c_out, s, h, w] f32.  `compute_dtype=jnp.bfloat16` uses the bf16 MXU
    path (v6e/v7x) with f32 accumulation."""
    n, c_in, s, h, w = x.shape
    c_out = weight.shape[0]
    assert weight.shape == (c_out, c_in, KH, KH)

    num_frames = n * s
    lin = (w + 2) * c_in          # one halo-padded row, channels-last
    k_dim = KH * lin              # MXU K: 3 rows x (w+2) cols x c_in
    lout = w * c_out              # lane-dense output width
    num_rows = num_frames * h

    # ---- input-side glue (input is ~c_out/c_in smaller than the output) -----
    # [n, c_in, s, h, w] -> frames NHWC -> halo pad -> per-output-row 3-row gather
    xf = jnp.transpose(x, (0, 2, 3, 4, 1)).reshape(num_frames, h, w, c_in)
    xp = jnp.pad(xf, ((0, 0), (1, 1), (1, 1), (0, 0)))
    xp = xp.reshape(num_frames, h + 2, lin)
    lhs = jnp.concatenate([xp[:, 0:h], xp[:, 1:h + 1], xp[:, 2:h + 2]], axis=-1)
    lhs = lhs.reshape(num_rows, k_dim).astype(compute_dtype)

    bmat = _band_weights(weight, w, c_in, c_out, compute_dtype)   # (k_dim, lout)

    in_bytes = jnp.dtype(compute_dtype).itemsize
    block_rows = _pick_block_rows(num_rows, k_dim, lout, in_bytes)
    grid = (num_rows // block_rows,) if num_rows % block_rows == 0 else (1,)
    if grid == (1,):
        block_rows = num_rows

    kernel = functools.partial(_set_conv_kernel, negative_slope=negative_slope)

    out = pl.pallas_call(
        kernel,
        out_shape=jax.ShapeDtypeStruct((num_rows, lout), jnp.float32),
        grid_spec=pltpu.PrefetchScalarGridSpec(
            num_scalar_prefetch=0,
            grid=grid,
            in_specs=[
                # block of output rows, K folded taps per row
                pl.BlockSpec((block_rows, k_dim), lambda i: (i, 0)),
                # single folded weight tensor, resident (constant index_map)
                pl.BlockSpec((k_dim, lout), lambda i: (0, 0)),
            ],
            # lane-dense output block: last dim = w*c_out
            out_specs=pl.BlockSpec((block_rows, lout), lambda i: (i, 0)),
        ),
        compiler_params=pltpu.CompilerParams(
            dimension_semantics=("parallel",),
            vmem_limit_bytes=32 * 1024 * 1024,
        ),
    )(lhs, bmat)                                       # [n*s*h, w*c_out]

    # ---- SetBlockWrapper output glue: -> [n, c_out, s, h, w] -----------------
    out = out.reshape(n, s, h, w, c_out)
    return jnp.transpose(out, (0, 4, 1, 2, 3))


# --------------------------------------------------------------------------- #
# Pure-JAX reference (correctness check)
# --------------------------------------------------------------------------- #
def _reference(x, weight, negative_slope=None):
    n, c_in, s, h, w = x.shape
    c_out = weight.shape[0]
    xf = jnp.transpose(x, (0, 2, 1, 3, 4)).reshape(n * s, c_in, h, w)
    yf = jax.lax.conv_general_dilated(
        xf, weight, window_strides=(1, 1), padding="SAME",
        dimension_numbers=("NCHW", "OIHW", "NCHW"),
        precision=jax.lax.Precision.HIGHEST)
    if negative_slope is not None:
        yf = jnp.where(yf >= 0, yf, negative_slope * yf)
    return jnp.transpose(yf.reshape(n, s, c_out, h, w), (0, 2, 1, 3, 4))


if __name__ == "__main__":
    # Small shapes consistent with SwinGait3D's stem: silhouettes c_in=1 -> 64 channels.
    n, c_in, s, h, w = 2, 1, 8, 16, 16
    c_out = 64

    key = jax.random.PRNGKey(0)
    kx, kw_, kx2, kw2 = jax.random.split(key, 4)
    x = jax.random.normal(kx, (n, c_in, s, h, w), dtype=jnp.float32)
    weight = jax.random.normal(kw_, (c_out, c_in, KH, KH), dtype=jnp.float32) * 0.1

    # Stem: SetBlockWrapper(Conv2d(1, 64, 3, 1, 1) + LeakyReLU), f32 MXU path.
    y = jax.block_until_ready(set_block_conv2d(x, weight, negative_slope=0.01))
    y_ref = _reference(x, weight, negative_slope=0.01)
    assert y.shape == (n, c_out, s, h, w), y.shape
    assert jnp.allclose(y, y_ref, atol=1e-3, rtol=1e-3), "f32 mismatch vs reference"

    # bf16 MXU operand path (v6e / v7x), f32 accumulation — looser tolerance.
    y_bf16 = jax.block_until_ready(
        set_block_conv2d(x, weight, negative_slope=0.01, compute_dtype=jnp.bfloat16))
    assert jnp.allclose(y_bf16, y_ref, atol=5e-2, rtol=5e-2), "bf16 mismatch vs reference"

    # Generic channel counts (pure conv, no activation) to exercise c_in > 1 banding.
    c_in2, c_out2 = 4, 8
    x2 = jax.random.normal(kx2, (n, c_in2, s, h, w), dtype=jnp.float32)
    w2 = jax.random.normal(kw2, (c_out2, c_in2, KH, KH), dtype=jnp.float32) * 0.1
    y2 = jax.block_until_ready(set_block_conv2d(x2, w2))
    assert jnp.allclose(y2, _reference(x2, w2), atol=1e-3, rtol=1e-3), "generic mismatch"

    print("KERNEL_OK")
</pallas_src>

<mosaic_0001>
module attributes {stable_mosaic.version = 11 : i64} {
  func.func @_set_conv_kernel(%arg0: i32, %arg1: memref<128x54xf32, #tpu.memory_space<vmem>>, %arg2: memref<54x1024xf32, #tpu.memory_space<vmem>>, %arg3: memref<128x1024xf32, #tpu.memory_space<vmem>>) attributes {dimension_semantics = [#tpu.dimension_semantics<parallel>], iteration_bounds = array<i64: 2>, scalar_prefetch = 0 : i64, scratch_operands = 0 : i64, tpu.core_type = #tpu.core_type<tc>, window_params = [{transform_indices = @transform_0, window_bounds = array<i64: 128, 54>}, {pipeline_mode = #tpu.pipeline_mode<synchronous>, transform_indices = @transform_1, window_bounds = array<i64: 54, 1024>}, {transform_indices = @transform_2, window_bounds = array<i64: 128, 1024>}]} {
    %c0 = arith.constant 0 : index
    %c0_0 = arith.constant 0 : index
    %0 = vector.load %arg1[%c0, %c0_0] : memref<128x54xf32, #tpu.memory_space<vmem>>, vector<128x54xf32>
    %c0_1 = arith.constant 0 : index
    %c0_2 = arith.constant 0 : index
    %1 = vector.load %arg2[%c0_1, %c0_2] : memref<54x1024xf32, #tpu.memory_space<vmem>>, vector<54x1024xf32>
    %cst = arith.constant dense<0.000000e+00> : vector<128x1024xf32>
    %2 = tpu.matmul %0, %1, %cst {dimension_numbers = #tpu.dot_dimension_numbers<[1], [0], [0], [1], [0, 0, 1, 1], [], []>} : vector<128x54xf32>, vector<54x1024xf32>, vector<128x1024xf32> -> vector<128x1024xf32>
    %cst_3 = arith.constant 0.000000e+00 : f32
    %3 = vector.broadcast %cst_3 : f32 to vector<128x1024xf32>
    %4 = arith.cmpf oge, %2, %3 : vector<128x1024xf32>
    %cst_4 = arith.constant 0.00999999977 : f32
    %5 = vector.broadcast %cst_4 : f32 to vector<128x1024xf32>
    %6 = arith.mulf %5, %2 : vector<128x1024xf32>
    %7 = arith.select %4, %2, %6 : vector<128x1024xi1>, vector<128x1024xf32>
    %c0_5 = arith.constant 0 : index
    %c0_6 = arith.constant 0 : index
    %8 = vector.load %arg3[%c0_5, %c0_6] : memref<128x1024xf32, #tpu.memory_space<vmem>>, vector<128x1024xf32>
    tpu.vector_store %arg3[%c0_5, %c0_6], %7 {strides = array<i32>} : memref<128x1024xf32, #tpu.memory_space<vmem>>, vector<128x1024xf32>,
    return
  }
  func.func @transform_0(%arg0: i32) -> (i32, i32) {
    %c0_i32 = arith.constant 0 : i32
    %c0_i32_0 = arith.constant 0 : i32
    return %arg0, %c0_i32 : i32, i32
  }
  func.func @transform_1(%arg0: i32) -> (i32, i32) {
    %c0_i32 = arith.constant 0 : i32
    %c0_i32_0 = arith.constant 0 : i32
    %c0_i32_1 = arith.constant 0 : i32
    return %c0_i32, %c0_i32_0 : i32, i32
  }
  func.func @transform_2(%arg0: i32) -> (i32, i32) {
    %c0_i32 = arith.constant 0 : i32
    %c0_i32_0 = arith.constant 0 : i32
    return %arg0, %c0_i32 : i32, i32
  }
}

</mosaic_0001>

<bundles_post_ra>
// kernel: set_block_conv2d.1
= control target key start
LH: loop header
LB: loop body
LE: loop exit
PB: predicated region body
PF: predicated region fallthrough
CT: control target
= control target key end

     0   :  { %s1627_s9 = smov 0   ;;  %s2196_s0 = inlined_call_operand.vmem [shape: f32[256,54], index: 0, kind: input, shape index: {}]   ;;  %s2197_s1 = inlined_call_operand.vmem [shape: f32[54,1024], index: 1, kind: input, shape index: {}]   ;;  %s2198_s2 = inlined_call_operand.vmem [shape: f32[256,1024], index: 2, kind: output, shape index: {}]  }
   0x1 LB: > { %s1509_s10 = sadd.s32 4294967295, %s1609_s9   ;;  %p1513_p0 = scmp.ge.s32.totalorder %s1609_s9, 1  ;;  %s1609_s9 = sphi %s1627_s9, %s12_s9  }
   0x2   : > { %p113_p1 = scmp.lt.s32.totalorder %s1609_s9, 3 }
   0x4   : > { %p114_p2 = pnand %p1513_p0, %p113_p1 }
   0x5   : > { %s1514_s29 = sshll.u32 (!%p114_p2), %s1509_s10, 4 }
   0x6   : > { %117 = sbr.rel (%p114_p2) target bundleno = 351 (0x15f), region = 28  ;;  %p137_p3 = scmp.lt.s32.totalorder (!%p114_p2), %s1514_s29, 31 }
   0xb   : > { %v214_v0 = vld [vmem:[%s2197_s1 + $0x188] sm:$0x3f]  ;;  %vm270_vm0 = vcmask 1045504   ;;  %v216_v1 = vld [vmem:[%s2197_s1 + $0x198] sm:$0x3f]  ;;  %v205_v6 = vld [vmem:[%s2197_s1 + $0x140] sm:$0xff] }
   0xc   : > { %v206_v2 = vld [vmem:[%s2197_s1 + $0x148] sm:$0xff]  ;;  %1519 = vmatprep.subr.msk.mxu0 %vm270_vm0, %v214_v0  ;;  %1537 = vmatprep.subr.msk.mxu1 %vm270_vm0, %v216_v1  ;;  %v213_v3 = vld [vmem:[%s2197_s1 + $0x180] sm:$0x3f]  ;;  %v215_v4 = vld [vmem:[%s2197_s1 + $0x190] sm:$0x3f]  ;;  %s2200_s29 = smov (!%p137_p3, %s1514_s29), 31 }
   0xd   : > { %v208_v5 = vld [vmem:[%s2197_s1 + $0x158] sm:$0xff]  ;;  %1520 = vmatpush1.msk.msra.mxu0 %vm270_vm0, %v213_v3  ;;  %1538 = vmatpush1.msk.msra.mxu1 %vm270_vm0, %v215_v4  ;;  %v207_v7 = vld [vmem:[%s2197_s1 + $0x150] sm:$0xff]  ;;  %v198_v8 = vld [vmem:[%s2197_s1 + $0x108] sm:$0xff]  ;;  %s1515_s25 = sshll.u32 %s2200_s29, 3  ;;  %vm221_vm1 = vcmask 441344   ;;  %v1611_v29 = vmov 0.0  }
   0xe   : > { %315 = vmatprep.subr.mxu0 %v206_v2  ;;  %476 = vmatprep.subr.mxu1 %v208_v5  ;;  %v200_v9 = vld [vmem:[%s2197_s1 + $0x118] sm:$0xff]  ;;  %v197_v10 = vld [vmem:[%s2197_s1 + $0x100] sm:$0xff]  ;;  %v199_v11 = vld [vmem:[%s2197_s1 + $0x110] sm:$0xff]  ;;  %s1723_s14 = scalar_lea.vmem %s2196_s0, %s1515_s25 }
   0xf   : > { %316 = vmatpush1.msra.mxu0 %v205_v6  ;;  %477 = vmatpush1.msra.mxu1 %v207_v7  ;;  %v190_v12 = vld [vmem:[%s2197_s1 + $0xc8] sm:$0xff]  ;;  %v192_v13 = vld [vmem:[%s2197_s1 + $0xd8] sm:$0xff]  ;;  %v189_v14 = vld [vmem:[%s2197_s1 + $0xc0] sm:$0xff] }
  0x10   : > { %317 = vmatprep.subr.mxu0 %v198_v8  ;;  %478 = vmatprep.subr.mxu1 %v200_v9  ;;  %v191_v15 = vld [vmem:[%s2197_s1 + $0xd0] sm:$0xff]  ;;  %v182_v16 = vld [vmem:[%s2197_s1 + $0x88] sm:$0xff]  ;;  %v184_v17 = vld [vmem:[%s2197_s1 + $0x98] sm:$0xff] }
  0x11   : > { %318 = vmatpush1.msra.mxu0 %v197_v10  ;;  %479 = vmatpush1.msra.mxu1 %v199_v11  ;;  %v181_v18 = vld [vmem:[%s2197_s1 + $0x80] sm:$0xff]  ;;  %v183_v19 = vld [vmem:[%s2197_s1 + $0x90] sm:$0xff]  ;;  %v174_v20 = vld [vmem:[%s2197_s1 + $0x48] sm:$0xff] }
  0x12   : > { %319 = vmatprep.subr.mxu0 %v190_v12  ;;  %480 = vmatprep.subr.mxu1 %v192_v13  ;;  %v176_v21 = vld [vmem:[%s2197_s1 + $0x58] sm:$0xff]  ;;  %v173_v22 = vld [vmem:[%s2197_s1 + $0x40] sm:$0xff]  ;;  %v175_v23 = vld [vmem:[%s2197_s1 + $0x50] sm:$0xff] }
  0x13   : > { %320 = vmatpush1.msra.mxu0 %v189_v14  ;;  %481 = vmatpush1.msra.mxu1 %v191_v15  ;;  %v166_v24 = vld [vmem:[%s2197_s1 + $0x8] sm:$0xff]  ;;  %v168_v25 = vld [vmem:[%s2197_s1 + $0x18] sm:$0xff]  ;;  %v165_v26 = vld [vmem:[%s2197_s1] sm:$0xff] }
  0x14   : > { %321 = vmatprep.subr.mxu0 %v182_v16  ;;  %482 = vmatprep.subr.mxu1 %v184_v17  ;;  %v167_v27 = vld [vmem:[%s2197_s1 + $0x10] sm:$0xff]  ;;  %v1732_v28 = vld [vmem:[%s1723_s14] sm:$0xff]  ;;  %v218_v30 = vld [vmem:[%s2197_s1 + $0x1a8] sm:$0x3f] }
  0x15   : > { %322 = vmatpush1.msra.mxu0 %v181_v18  ;;  %483 = vmatpush1.msra.mxu1 %v183_v19  ;;  %v220_v31 = vld [vmem:[%s2197_s1 + $0x1b8] sm:$0x3f]  ;;  %v217_v32 = vld [vmem:[%s2197_s1 + $0x1a0] sm:$0x3f]  ;;  %v219_v33 = vld [vmem:[%s2197_s1 + $0x1b0] sm:$0x3f] }
  0x16   : > { %323 = vmatprep.subr.mxu0 %v174_v20  ;;  %484 = vmatprep.subr.mxu1 %v176_v21  ;;  %v1755_v34 = vld [vmem:[%s1723_s14 + $0x8] sm:$0xff]  ;;  %v212_v36 = vld [vmem:[%s2197_s1 + $0x178] sm:$0xff]  ;;  %v209_v37 = vld [vmem:[%s2197_s1 + $0x160] sm:$0xff] }
  0x17   : > { %324 = vmatpush1.msra.mxu0 %v173_v22  ;;  %485 = vmatpush1.msra.mxu1 %v175_v23  ;;  %v210_v35 = vld [vmem:[%s2197_s1 + $0x168] sm:$0xff]  ;;  %v211_v38 = vld [vmem:[%s2197_s1 + $0x170] sm:$0xff]  ;;  %v204_v41 = vld [vmem:[%s2197_s1 + $0x138] sm:$0xff] }
  0x18   : > { %325 = vmatprep.subr.mxu0 %v166_v24  ;;  %486 = vmatprep.subr.mxu1 %v168_v25  ;;  %v1780_v39 = vld [vmem:[%s1723_s14 + $0x10] sm:$0xff]  ;;  %v202_v40 = vld [vmem:[%s2197_s1 + $0x128] sm:$0xff]  ;;  %v201_v42 = vld [vmem:[%s2197_s1 + $0x120] sm:$0xff] }
  0x19   : > { %326 = vmatpush1.msra.mxu0 %v165_v26  ;;  %359 = vmatprep.mubr.f32.mxu0 %v1611_v29  ;;  %v203_v43 = vld [vmem:[%s2197_s1 + $0x130] sm:$0xff]  ;;  %v1801_v44 = vld [vmem:[%s1723_s14 + $0x18] sm:$0xff]  ;;  %v194_v45 = vld [vmem:[%s2197_s1 + $0xe8] sm:$0xff] }
  0x1a   : > { %487 = vmatpush1.msra.mxu1 %v167_v27  ;;  %520 = vmatprep.mubr.f32.mxu1 %v1611_v29  ;;  %v196_v46 = vld [vmem:[%s2197_s1 + $0xf8] sm:$0xff]  ;;  %v193_v47 = vld [vmem:[%s2197_s1 + $0xe0] sm:$0xff]  ;;  %v195_v48 = vld [vmem:[%s2197_s1 + $0xf0] sm:$0xff] }
  0x1b   : > { %1521 = vmatmul.mubr.msk.f32.vlgmr.msra.gmra.mxu0 %vm221_vm1, %v1732_v28  ;;  %1539 = vmatmul.mubr.msk.f32.vlgmr.msra.gmra.mxu1 %vm221_vm1, %v1732_v28  ;;  %v1822_v49 = vld [vmem:[%s1723_s14 + $0x20] sm:$0xff]  ;;  %v186_v50 = vld [vmem:[%s2197_s1 + $0xa8] sm:$0xff]  ;;  %v188_v51 = vld [vmem:[%s2197_s1 + $0xb8] sm:$0xff] }
  0x1c   : > { %1555 = vmatprep.subr.msk.mxu0 %vm270_vm0, %v218_v30  ;;  %1573 = vmatprep.subr.msk.mxu1 %vm270_vm0, %v220_v31  ;;  %v185_v52 = vld [vmem:[%s2197_s1 + $0xa0] sm:$0xff]  ;;  %v187_v53 = vld [vmem:[%s2197_s1 + $0xb0] sm:$0xff]  ;;  %v1843_v54 = vld [vmem:[%s1723_s14 + $0x28] sm:$0xff] }
  0x1d   : > { %1556 = vmatpush1.msk.msra.mxu0 %vm270_vm0, %v217_v32  ;;  %1574 = vmatpush1.msk.msra.mxu1 %vm270_vm0, %v219_v33  ;;  %v178_v55 = vld [vmem:[%s2197_s1 + $0x68] sm:$0xff]  ;;  %v180_v56 = vld [vmem:[%s2197_s1 + $0x78] sm:$0xff]  ;;  %v177_v57 = vld [vmem:[%s2197_s1 + $0x60] sm:$0xff] }
  0x1e   : > { %365 = vmatprep.mubr.f32.mxu0 %v1611_v29  ;;  %526 = vmatprep.mubr.f32.mxu1 %v1611_v29  ;;  %v179_v58 = vld [vmem:[%s2197_s1 + $0x70] sm:$0xff]  ;;  %v170_v60 = vld [vmem:[%s2197_s1 + $0x28] sm:$0xff]  ;;  %v172_v61 = vld [vmem:[%s2197_s1 + $0x38] sm:$0xff] }
  0x1f   : > { %1522 = vmatmul.mubr.msk.f32.gmra.mxu0 %vm221_vm1, %v1755_v34  ;;  %1540 = vmatmul.mubr.msk.f32.gmra.mxu1 %vm221_vm1, %v1755_v34  ;;  %v1864_v59 = vld [vmem:[%s1723_s14 + $0x30] sm:$0xff]  ;;  %v169_v62 = vld [vmem:[%s2197_s1 + $0x20] sm:$0xff]  ;;  %v1885_v0 = vld [vmem:[%s1723_s14 + $0x38] sm:$0xff] }
  0x20   : > { %371 = vmatprep.mubr.f32.mxu0 %v1611_v29  ;;  %532 = vmatprep.mubr.f32.mxu1 %v1611_v29  ;;  %v171_v63 = vld [vmem:[%s2197_s1 + $0x30] sm:$0xff]  ;;  %v1894_v1 = vld [vmem:[%s1723_s14 + $0x40] sm:$0xff]  ;;  %v1903_v2 = vld [vmem:[%s1723_s14 + $0x48] sm:$0xff] }
  0x21   : > { %637 = vmatprep.subr.mxu0 %v210_v35  ;;  %798 = vmatprep.subr.mxu1 %v212_v36  ;;  %v1912_v3 = vld [vmem:[%s1723_s14 + $0x50] sm:$0xff]  ;;  %v1921_v4 = vld [vmem:[%s1723_s14 + $0x58] sm:$0xff]  ;;  %v1930_v5 = vld [vmem:[%s1723_s14 + $0x60] sm:$0xff] }
  0x22   : > { %638 = vmatpush1.msra.mxu0 %v209_v37  ;;  %799 = vmatpush1.msra.mxu1 %v211_v38  ;;  %v1939_v6 = vld [vmem:[%s1723_s14 + $0x68] sm:$0xff]  ;;  %v1948_v7 = vld [vmem:[%s1723_s14 + $0x70] sm:$0xff]  ;;  %v1957_v8 = vld [vmem:[%s1723_s14 + $0x78] sm:$0xff]  ;;  %s1593_s14 = sshll.u32 %s2200_s29, 6 }
  0x23   : > { %1523 = vmatmul.mubr.msk.f32.gmra.mxu0 %vm221_vm1, %v1780_v39  ;;  %1541 = vmatmul.mubr.msk.f32.gmra.mxu1 %vm221_vm1, %v1780_v39  ;;  %s2063_s27 = scalar_lea.vmem %s2198_s2, %s1593_s14 }
  0x24   : > { %377 = vmatprep.mubr.f32.mxu0 %v1611_v29  ;;  %538 = vmatprep.mubr.f32.mxu1 %v1611_v29 }
  0x25   : > { %639 = vmatprep.subr.mxu0 %v202_v40  ;;  %800 = vmatprep.subr.mxu1 %v204_v41 }
  0x26   : > { %640 = vmatpush1.msra.mxu0 %v201_v42  ;;  %801 = vmatpush1.msra.mxu1 %v203_v43 }
  0x27   : > { %1524 = vmatmul.mubr.msk.f32.gmra.mxu0 %vm221_vm1, %v1801_v44  ;;  %1542 = vmatmul.mubr.msk.f32.gmra.mxu1 %vm221_vm1, %v1801_v44 }
  0x28   : > { %383 = vmatprep.mubr.f32.mxu0 %v1611_v29  ;;  %544 = vmatprep.mubr.f32.mxu1 %v1611_v29 }
  0x29   : > { %641 = vmatprep.subr.mxu0 %v194_v45  ;;  %802 = vmatprep.subr.mxu1 %v196_v46 }
  0x2a   : > { %642 = vmatpush1.msra.mxu0 %v193_v47  ;;  %803 = vmatpush1.msra.mxu1 %v195_v48 }
  0x2b   : > { %1525 = vmatmul.mubr.msk.f32.gmra.mxu0 %vm221_vm1, %v1822_v49  ;;  %1543 = vmatmul.mubr.msk.f32.gmra.mxu1 %vm221_vm1, %v1822_v49 }
  0x2c   : > { %389 = vmatprep.mubr.f32.mxu0 %v1611_v29  ;;  %550 = vmatprep.mubr.f32.mxu1 %v1611_v29 }
  0x2d   : > { %643 = vmatprep.subr.mxu0 %v186_v50  ;;  %804 = vmatprep.subr.mxu1 %v188_v51 }
  0x2e   : > { %644 = vmatpush1.msra.mxu0 %v185_v52  ;;  %805 = vmatpush1.msra.mxu1 %v187_v53 }
  0x2f   : > { %1526 = vmatmul.mubr.msk.f32.gmra.mxu0 %vm221_vm1, %v1843_v54  ;;  %1544 = vmatmul.mubr.msk.f32.gmra.mxu1 %vm221_vm1, %v1843_v54 }
  0x30   : > { %395 = vmatprep.mubr.f32.mxu0 %v1611_v29  ;;  %556 = vmatprep.mubr.f32.mxu1 %v1611_v29 }
  0x31   : > { %645 = vmatprep.subr.mxu0 %v178_v55  ;;  %806 = vmatprep.subr.mxu1 %v180_v56 }
  0x32   : > { %646 = vmatpush1.msra.mxu0 %v177_v57  ;;  %807 = vmatpush1.msra.mxu1 %v179_v58 }
  0x33   : > { %1527 = vmatmul.mubr.msk.f32.gmra.mxu0 %vm221_vm1, %v1864_v59  ;;  %1545 = vmatmul.mubr.msk.f32.gmra.mxu1 %vm221_vm1, %v1864_v59 }
  0x34   : > { %401 = vmatprep.mubr.f32.mxu0 %v1611_v29  ;;  %562 = vmatprep.mubr.f32.mxu1 %v1611_v29 }
  0x35   : > { %647 = vmatprep.subr.mxu0 %v170_v60  ;;  %808 = vmatprep.subr.mxu1 %v172_v61 }
  0x36   : > { %648 = vmatpush1.msra.mxu0 %v169_v62  ;;  %809 = vmatpush1.msra.mxu1 %v171_v63 }
  0x37   : > { %1528 = vmatmul.mubr.msk.f32.gmra.mxu0 %vm221_vm1, %v1885_v0  ;;  %1546 = vmatmul.mubr.msk.f32.gmra.mxu1 %vm221_vm1, %v1885_v0 }
  0x38   : > { %407 = vmatprep.mubr.f32.mxu0 %v1611_v29  ;;  %568 = vmatprep.mubr.f32.mxu1 %v1611_v29 }
  0x3b   : > { %1529 = vmatmul.mubr.msk.f32.gmra.mxu0 %vm221_vm1, %v1894_v1  ;;  %1547 = vmatmul.mubr.msk.f32.gmra.mxu1 %vm221_vm1, %v1894_v1 }
  0x3c   : > { %413 = vmatprep.mubr.f32.mxu0 %v1611_v29  ;;  %574 = vmatprep.mubr.f32.mxu1 %v1611_v29 }
  0x3f   : > { %1530 = vmatmul.mubr.msk.f32.gmra.mxu0 %vm221_vm1, %v1903_v2  ;;  %1548 = vmatmul.mubr.msk.f32.gmra.mxu1 %vm221_vm1, %v1903_v2 }
  0x40   : > { %419 = vmatprep.mubr.f32.mxu0 %v1611_v29  ;;  %580 = vmatprep.mubr.f32.mxu1 %v1611_v29 }
  0x43   : > { %1531 = vmatmul.mubr.msk.f32.gmra.mxu0 %vm221_vm1, %v1912_v3  ;;  %1549 = vmatmul.mubr.msk.f32.gmra.mxu1 %vm221_vm1, %v1912_v3 }
  0x44   : > { %425 = vmatprep.mubr.f32.mxu0 %v1611_v29  ;;  %586 = vmatprep.mubr.f32.mxu1 %v1611_v29 }
  0x47   : > { %1532 = vmatmul.mubr.msk.f32.gmra.mxu0 %vm221_vm1, %v1921_v4  ;;  %1550 = vmatmul.mubr.msk.f32.gmra.mxu1 %vm221_vm1, %v1921_v4 }
  0x48   : > { %431 = vmatprep.mubr.f32.mxu0 %v1611_v29  ;;  %592 = vmatprep.mubr.f32.mxu1 %v1611_v29 }
  0x4b   : > { %1533 = vmatmul.mubr.msk.f32.gmra.mxu0 %vm221_vm1, %v1930_v5  ;;  %1551 = vmatmul.mubr.msk.f32.gmra.mxu1 %vm221_vm1, %v1930_v5 }
  0x4c   : > { %437 = vmatprep.mubr.f32.mxu0 %v1611_v29  ;;  %598 = vmatprep.mubr.f32.mxu1 %v1611_v29 }
  0x4f   : > { %1534 = vmatmul.mubr.msk.f32.gmra.mxu0 %vm221_vm1, %v1939_v6  ;;  %1552 = vmatmul.mubr.msk.f32.gmra.mxu1 %vm221_vm1, %v1939_v6 }
  0x50   : > { %443 = vmatprep.mubr.f32.mxu0 %v1611_v29  ;;  %604 = vmatprep.mubr.f32.mxu1 %v1611_v29 }
  0x53   : > { %1535 = vmatmul.mubr.msk.f32.gmra.mxu0 %vm221_vm1, %v1948_v7  ;;  %1553 = vmatmul.mubr.msk.f32.gmra.mxu1 %vm221_vm1, %v1948_v7 }
  0x54   : > { %449 = vmatprep.mubr.f32.mxu0 %v1611_v29  ;;  %610 = vmatprep.mubr.f32.mxu1 %v1611_v29 }
  0x57   : > { %1536 = vmatmul.mubr.msk.f32.gmra.mxu0 %vm221_vm1, %v1957_v8  ;;  %1554 = vmatmul.mubr.msk.f32.gmra.mxu1 %vm221_vm1, %v1957_v8 }
  0x58   : > { %681 = vmatprep.mubr.f32.mxu0 %v1611_v29  ;;  %842 = vmatprep.mubr.f32.mxu1 %v1611_v29 }
  0x5b   : > { %1557 = vmatmul.mubr.msk.f32.vlgmr.msra.gmra.mxu0 %vm221_vm1, %v1732_v28  ;;  %1575 = vmatmul.mubr.msk.f32.vlgmr.msra.gmra.mxu1 %vm221_vm1, %v1732_v28 }
  0x5c   : > { %687 = vmatprep.mubr.f32.mxu0 %v1611_v29  ;;  %848 = vmatprep.mubr.f32.mxu1 %v1611_v29 }
  0x5f   : > { %1558 = vmatmul.mubr.msk.f32.gmra.mxu0 %vm221_vm1, %v1755_v34  ;;  %1576 = vmatmul.mubr.msk.f32.gmra.mxu1 %vm221_vm1, %v1755_v34 }
  0x60   : > { %693 = vmatprep.mubr.f32.mxu0 %v1611_v29  ;;  %854 = vmatprep.mubr.f32.mxu1 %v1611_v29 }
  0x63   : > { %1559 = vmatmul.mubr.msk.f32.gmra.mxu0 %vm221_vm1, %v1780_v39  ;;  %1577 = vmatmul.mubr.msk.f32.gmra.mxu1 %vm221_vm1, %v1780_v39 }
  0x64   : > { %699 = vmatprep.mubr.f32.mxu0 %v1611_v29  ;;  %860 = vmatprep.mubr.f32.mxu1 %v1611_v29 }
  0x67   : > { %1560 = vmatmul.mubr.msk.f32.gmra.mxu0 %vm221_vm1, %v1801_v44  ;;  %1578 = vmatmul.mubr.msk.f32.gmra.mxu1 %vm221_vm1, %v1801_v44 }
  0x68   : > { %705 = vmatprep.mubr.f32.mxu0 %v1611_v29  ;;  %866 = vmatprep.mubr.f32.mxu1 %v1611_v29 }
  0x6b   : > { %1561 = vmatmul.mubr.msk.f32.gmra.mxu0 %vm221_vm1, %v1822_v49  ;;  %1579 = vmatmul.mubr.msk.f32.gmra.mxu1 %vm221_vm1, %v1822_v49 }
  0x6c   : > { %711 = vmatprep.mubr.f32.mxu0 %v1611_v29  ;;  %872 = vmatprep.mubr.f32.mxu1 %v1611_v29 }
  0x6f   : > { %1562 = vmatmul.mubr.msk.f32.gmra.mxu0 %vm221_vm1, %v1843_v54  ;;  %1580 = vmatmul.mubr.msk.f32.gmra.mxu1 %vm221_vm1, %v1843_v54 }
  0x70   : > { %717 = vmatprep.mubr.f32.mxu0 %v1611_v29  ;;  %878 = vmatprep.mubr.f32.mxu1 %v1611_v29 }
  0x73   : > { %1563 = vmatmul.mubr.msk.f32.gmra.mxu0 %vm221_vm1, %v1864_v59  ;;  %1581 = vmatmul.mubr.msk.f32.gmra.mxu1 %vm221_vm1, %v1864_v59 }
  0x74   : > { %723 = vmatprep.mubr.f32.mxu0 %v1611_v29  ;;  %884 = vmatprep.mubr.f32.mxu1 %v1611_v29 }
  0x77   : > { %1564 = vmatmul.mubr.msk.f32.gmra.mxu0 %vm221_vm1, %v1885_v0  ;;  %1582 = vmatmul.mubr.msk.f32.gmra.mxu1 %vm221_vm1, %v1885_v0 }
  0x78   : > { %729 = vmatprep.mubr.f32.mxu0 %v1611_v29  ;;  %890 = vmatprep.mubr.f32.mxu1 %v1611_v29 }
  0x7b   : > { %1565 = vmatmul.mubr.msk.f32.gmra.mxu0 %vm221_vm1, %v1894_v1  ;;  %1583 = vmatmul.mubr.msk.f32.gmra.mxu1 %vm221_vm1, %v1894_v1 }
  0x7c   : > { %735 = vmatprep.mubr.f32.mxu0 %v1611_v29  ;;  %896 = vmatprep.mubr.f32.mxu1 %v1611_v29 }
  0x7f   : > { %1566 = vmatmul.mubr.msk.f32.gmra.mxu0 %vm221_vm1, %v1903_v2  ;;  %1584 = vmatmul.mubr.msk.f32.gmra.mxu1 %vm221_vm1, %v1903_v2 }
  0x80   : > { %741 = vmatprep.mubr.f32.mxu0 %v1611_v29  ;;  %902 = vmatprep.mubr.f32.mxu1 %v1611_v29 }
  0x83   : > { %1567 = vmatmul.mubr.msk.f32.gmra.mxu0 %vm221_vm1, %v1912_v3  ;;  %1585 = vmatmul.mubr.msk.f32.gmra.mxu1 %vm221_vm1, %v1912_v3 }
  0x84   : > { %747 = vmatprep.mubr.f32.mxu0 %v1611_v29  ;;  %908 = vmatprep.mubr.f32.mxu1 %v1611_v29 }
  0x87   : > { %1568 = vmatmul.mubr.msk.f32.gmra.mxu0 %vm221_vm1, %v1921_v4  ;;  %1586 = vmatmul.mubr.msk.f32.gmra.mxu1 %vm221_vm1, %v1921_v4 }
  0x88   : > { %753 = vmatprep.mubr.f32.mxu0 %v1611_v29  ;;  %914 = vmatprep.mubr.f32.mxu1 %v1611_v29 }
  0x8b   : > { %1569 = vmatmul.mubr.msk.f32.gmra.mxu0 %vm221_vm1, %v1930_v5  ;;  %1587 = vmatmul.mubr.msk.f32.gmra.mxu1 %vm221_vm1, %v1930_v5 }
  0x8c   : > { %759 = vmatprep.mubr.f32.mxu0 %v1611_v29  ;;  %920 = vmatprep.mubr.f32.mxu1 %v1611_v29 }
  0x8f   : > { %1570 = vmatmul.mubr.msk.f32.gmra.mxu0 %vm221_vm1, %v1939_v6  ;;  %1588 = vmatmul.mubr.msk.f32.gmra.mxu1 %vm221_vm1, %v1939_v6 }
  0x90   : > { %765 = vmatprep.mubr.f32.mxu0 %v1611_v29  ;;  %926 = vmatprep.mubr.f32.mxu1 %v1611_v29 }
  0x93   : > { %1571 = vmatmul.mubr.msk.f32.gmra.mxu0 %vm221_vm1, %v1948_v7  ;;  %1589 = vmatmul.mubr.msk.f32.gmra.mxu1 %vm221_vm1, %v1948_v7 }
  0x94   : > { %771 = vmatprep.mubr.f32.mxu0 %v1611_v29  ;;  %932 = vmatprep.mubr.f32.mxu1 %v1611_v29 }
  0x97   : > { %1572 = vmatmul.mubr.msk.f32.gmra.mxu0 %vm221_vm1, %v1957_v8  ;;  %1590 = vmatmul.mubr.msk.f32.gmra.mxu1 %vm221_vm1, %v1957_v8 }
  0xdb   : > { %v361_v9 = vpop.f32.mrf.mxu0  ;;  %v522_v10 = vpop.f32.mrf.mxu1 }
  0xdc   : > { %vm939_vm2 = vcmp.ge.f32.partialorder %v361_v9, 0.0  ;;  %v1067_v11 = vmul.f32 0.01, %v361_v9  ;;  %vm941_vm3 = vcmp.ge.f32.partialorder %v522_v10, 0.0  ;;  %v1069_v12 = vmul.f32 0.01, %v522_v10 }
  0xdd   : > { %v363_v13 = vpop.f32.mrf.mxu0  ;;  %v524_v14 = vpop.f32.mrf.mxu1 }
  0xde   : > { %v1195_v15 = vsel %vm939_vm2, %v361_v9, %v1067_v11  ;;  %v1197_v16 = vsel %vm941_vm3, %v522_v10, %v1069_v12  ;;  %vm940_vm4 = vcmp.ge.f32.partialorder %v363_v13, 0.0  ;;  %v1068_v17 = vmul.f32 0.01, %v363_v13 }
  0xdf   : > { %1323 = vst [vmem:[%s2063_s27] sm:$0xff] %v1195_v15  ;;  %1325 = vst [vmem:[%s2063_s27 + $0x10] sm:$0xff] %v1197_v16  ;;  %vm942_vm5 = vcmp.ge.f32.partialorder %v524_v14, 0.0  ;;  %v1070_v18 = vmul.f32 0.01, %v524_v14  ;;  %v367_v19 = vpop.f32.mrf.mxu0  ;;  %v528_v20 = vpop.f32.mrf.mxu1 }
  0xe0   : > { %v1196_v21 = vsel %vm940_vm4, %v363_v13, %v1068_v17  ;;  %vm947_vm6 = vcmp.ge.f32.partialorder %v367_v19, 0.0  ;;  %v1075_v22 = vmul.f32 0.01, %v367_v19  ;;  %vm949_vm7 = vcmp.ge.f32.partialorder %v528_v20, 0.0 }
  0xe1   : > { %1324 = vst [vmem:[%s2063_s27 + $0x8] sm:$0xff] %v1196_v21  ;;  %v1198_v23 = vsel %vm942_vm5, %v524_v14, %v1070_v18  ;;  %v1077_v24 = vmul.f32 0.01, %v528_v20  ;;  %v369_v25 = vpop.f32.mrf.mxu0  ;;  %v530_v26 = vpop.f32.mrf.mxu1 }
  0xe2   : > { %1326 = vst [vmem:[%s2063_s27 + $0x18] sm:$0xff] %v1198_v23  ;;  %v1203_v27 = vsel %vm947_vm6, %v367_v19, %v1075_v22  ;;  %vm948_vm8 = vcmp.ge.f32.partialorder %v369_v25, 0.0  ;;  %v1076_v28 = vmul.f32 0.01, %v369_v25  ;;  %vm950_vm9 = vcmp.ge.f32.partialorder %v530_v26, 0.0 }
  0xe3   : > { %1331 = vst [vmem:[%s2063_s27 + $0x40] sm:$0xff] %v1203_v27  ;;  %v1205_v29 = vsel %vm949_vm7, %v528_v20, %v1077_v24  ;;  %v1078_v30 = vmul.f32 0.01, %v530_v26  ;;  %v373_v31 = vpop.f32.mrf.mxu0  ;;  %v534_v32 = vpop.f32.mrf.mxu1 }
  0xe4   : > { %1333 = vst [vmem:[%s2063_s27 + $0x50] sm:$0xff] %v1205_v29  ;;  %v1204_v33 = vsel %vm948_vm8, %v369_v25, %v1076_v28  ;;  %vm955_vm10 = vcmp.ge.f32.partialorder %v373_v31, 0.0  ;;  %v1083_v34 = vmul.f32 0.01, %v373_v31  ;;  %vm957_vm11 = vcmp.ge.f32.partialorder %v534_v32, 0.0 }
  0xe5   : > { %1332 = vst [vmem:[%s2063_s27 + $0x48] sm:$0xff] %v1204_v33  ;;  %v1206_v35 = vsel %vm950_vm9, %v530_v26, %v1078_v30  ;;  %v1085_v36 = vmul.f32 0.01, %v534_v32  ;;  %v375_v37 = vpop.f32.mrf.mxu0  ;;  %v536_v38 = vpop.f32.mrf.mxu1 }
  0xe6   : > { %1334 = vst [vmem:[%s2063_s27 + $0x58] sm:$0xff] %v1206_v35  ;;  %v1211_v39 = vsel %vm955_vm10, %v373_v31, %v1083_v34  ;;  %vm956_vm12 = vcmp.ge.f32.partialorder %v375_v37, 0.0  ;;  %v1084_v40 = vmul.f32 0.01, %v375_v37  ;;  %vm958_vm13 = vcmp.ge.f32.partialorder %v536_v38, 0.0 }
  0xe7   : > { %1339 = vst [vmem:[%s2063_s27 + $0x80] sm:$0xff] %v1211_v39  ;;  %v1213_v41 = vsel %vm957_vm11, %v534_v32, %v1085_v36  ;;  %v1086_v42 = vmul.f32 0.01, %v536_v38  ;;  %v379_v43 = vpop.f32.mrf.mxu0  ;;  %v540_v44 = vpop.f32.mrf.mxu1 }
  0xe8   : > { %1341 = vst [vmem:[%s2063_s27 + $0x90] sm:$0xff] %v1213_v41  ;;  %v1212_v45 = vsel %vm956_vm12, %v375_v37, %v1084_v40  ;;  %vm963_vm14 = vcmp.ge.f32.partialorder %v379_v43, 0.0  ;;  %v1091_v46 = vmul.f32 0.01, %v379_v43  ;;  %vm965_vm15 = vcmp.ge.f32.partialorder %v540_v44, 0.0 }
  0xe9   : > { %1340 = vst [vmem:[%s2063_s27 + $0x88] sm:$0xff] %v1212_v45  ;;  %v1214_v47 = vsel %vm958_vm13, %v536_v38, %v1086_v42  ;;  %v1093_v48 = vmul.f32 0.01, %v540_v44  ;;  %v381_v49 = vpop.f32.mrf.mxu0  ;;  %v542_v50 = vpop.f32.mrf.mxu1 }
  0xea   : > { %1342 = vst [vmem:[%s2063_s27 + $0x98] sm:$0xff] %v1214_v47  ;;  %v1219_v51 = vsel %vm963_vm14, %v379_v43, %v1091_v46  ;;  %vm964_vm0 = vcmp.ge.f32.partialorder %v381_v49, 0.0  ;;  %v1092_v52 = vmul.f32 0.01, %v381_v49  ;;  %vm966_vm1 = vcmp.ge.f32.partialorder %v542_v50, 0.0 }
  0xeb   : > { %1347 = vst [vmem:[%s2063_s27 + $0xc0] sm:$0xff] %v1219_v51  ;;  %v1221_v53 = vsel %vm965_vm15, %v540_v44, %v1093_v48  ;;  %v1094_v54 = vmul.f32 0.01, %v542_v50  ;;  %v385_v55 = vpop.f32.mrf.mxu0  ;;  %v546_v56 = vpop.f32.mrf.mxu1 }
  0xec   : > { %1349 = vst [vmem:[%s2063_s27 + $0xd0] sm:$0xff] %v1221_v53  ;;  %v1220_v57 = vsel %vm964_vm0, %v381_v49, %v1092_v52  ;;  %vm971_vm2 = vcmp.ge.f32.partialorder %v385_v55, 0.0  ;;  %v1099_v58 = vmul.f32 0.01, %v385_v55  ;;  %vm973_vm3 = vcmp.ge.f32.partialorder %v546_v56, 0.0 }
  0xed   : > { %1348 = vst [vmem:[%s2063_s27 + $0xc8] sm:$0xff] %v1220_v57  ;;  %v1222_v59 = vsel %vm966_vm1, %v542_v50, %v1094_v54  ;;  %v1101_v60 = vmul.f32 0.01, %v546_v56  ;;  %v387_v61 = vpop.f32.mrf.mxu0  ;;  %v548_v62 = vpop.f32.mrf.mxu1 }
  0xee   : > { %1350 = vst [vmem:[%s2063_s27 + $0xd8] sm:$0xff] %v1222_v59  ;;  %v1227_v63 = vsel %vm971_vm2, %v385_v55, %v1099_v58  ;;  %vm972_vm4 = vcmp.ge.f32.partialorder %v387_v61, 0.0  ;;  %v1100_v0 = vmul.f32 0.01, %v387_v61  ;;  %vm974_vm5 = vcmp.ge.f32.partialorder %v548_v62, 0.0 }
  0xef   : > { %1355 = vst [vmem:[%s2063_s27 + $0x100] sm:$0xff] %v1227_v63  ;;  %v1229_v1 = vsel %vm973_vm3, %v546_v56, %v1101_v60  ;;  %v1102_v2 = vmul.f32 0.01, %v548_v62  ;;  %v391_v3 = vpop.f32.mrf.mxu0  ;;  %v552_v4 = vpop.f32.mrf.mxu1 }
  0xf0   : > { %1357 = vst [vmem:[%s2063_s27 + $0x110] sm:$0xff] %v1229_v1  ;;  %v1228_v5 = vsel %vm972_vm4, %v387_v61, %v1100_v0  ;;  %vm979_vm6 = vcmp.ge.f32.partialorder %v391_v3, 0.0  ;;  %v1107_v6 = vmul.f32 0.01, %v391_v3  ;;  %vm981_vm7 = vcmp.ge.f32.partialorder %v552_v4, 0.0 }
  0xf1   : > { %1356 = vst [vmem:[%s2063_s27 + $0x108] sm:$0xff] %v1228_v5  ;;  %v1230_v7 = vsel %vm974_vm5, %v548_v62, %v1102_v2  ;;  %v1109_v8 = vmul.f32 0.01, %v552_v4  ;;  %v393_v9 = vpop.f32.mrf.mxu0  ;;  %v554_v10 = vpop.f32.mrf.mxu1 }
  0xf2   : > { %1358 = vst [vmem:[%s2063_s27 + $0x118] sm:$0xff] %v1230_v7  ;;  %v1235_v11 = vsel %vm979_vm6, %v391_v3, %v1107_v6  ;;  %vm980_vm8 = vcmp.ge.f32.partialorder %v393_v9, 0.0  ;;  %v1108_v12 = vmul.f32 0.01, %v393_v9  ;;  %vm982_vm9 = vcmp.ge.f32.partialorder %v554_v10, 0.0 }
  0xf3   : > { %1363 = vst [vmem:[%s2063_s27 + $0x140] sm:$0xff] %v1235_v11  ;;  %v1237_v13 = vsel %vm981_vm7, %v552_v4, %v1109_v8  ;;  %v1110_v14 = vmul.f32 0.01, %v554_v10  ;;  %v397_v15 = vpop.f32.mrf.mxu0  ;;  %v558_v16 = vpop.f32.mrf.mxu1 }
  0xf4   : > { %1365 = vst [vmem:[%s2063_s27 + $0x150] sm:$0xff] %v1237_v13  ;;  %v1236_v17 = vsel %vm980_vm8, %v393_v9, %v1108_v12  ;;  %vm987_vm10 = vcmp.ge.f32.partialorder %v397_v15, 0.0  ;;  %v1115_v18 = vmul.f32 0.01, %v397_v15  ;;  %vm989_vm11 = vcmp.ge.f32.partialorder %v558_v16, 0.0 }
  0xf5   : > { %1364 = vst [vmem:[%s2063_s27 + $0x148] sm:$0xff] %v1236_v17  ;;  %v1238_v19 = vsel %vm982_vm9, %v554_v10, %v1110_v14  ;;  %v1117_v20 = vmul.f32 0.01, %v558_v16  ;;  %v399_v21 = vpop.f32.mrf.mxu0  ;;  %v560_v22 = vpop.f32.mrf.mxu1 }
  0xf6   : > { %1366 = vst [vmem:[%s2063_s27 + $0x158] sm:$0xff] %v1238_v19  ;;  %v1243_v23 = vsel %vm987_vm10, %v397_v15, %v1115_v18  ;;  %vm988_vm12 = vcmp.ge.f32.partialorder %v399_v21, 0.0  ;;  %v1116_v24 = vmul.f32 0.01, %v399_v21  ;;  %vm990_vm13 = vcmp.ge.f32.partialorder %v560_v22, 0.0 }
  0xf7   : > { %1371 = vst [vmem:[%s2063_s27 + $0x180] sm:$0xff] %v1243_v23  ;;  %v1245_v25 = vsel %vm989_vm11, %v558_v16, %v1117_v20  ;;  %v1118_v26 = vmul.f32 0.01, %v560_v22  ;;  %v403_v27 = vpop.f32.mrf.mxu0  ;;  %v564_v28 = vpop.f32.mrf.mxu1 }
  0xf8   : > { %1373 = vst [vmem:[%s2063_s27 + $0x190] sm:$0xff] %v1245_v25  ;;  %v1244_v29 = vsel %vm988_vm12, %v399_v21, %v1116_v24  ;;  %vm995_vm14 = vcmp.ge.f32.partialorder %v403_v27, 0.0  ;;  %v1123_v30 = vmul.f32 0.01, %v403_v27  ;;  %vm997_vm15 = vcmp.ge.f32.partialorder %v564_v28, 0.0 }
  0xf9   : > { %1372 = vst [vmem:[%s2063_s27 + $0x188] sm:$0xff] %v1244_v29  ;;  %v1246_v31 = vsel %vm990_vm13, %v560_v22, %v1118_v26  ;;  %v1125_v32 = vmul.f32 0.01, %v564_v28  ;;  %v405_v33 = vpop.f32.mrf.mxu0  ;;  %v566_v34 = vpop.f32.mrf.mxu1 }
  0xfa   : > { %1374 = vst [vmem:[%s2063_s27 + $0x198] sm:$0xff] %v1246_v31  ;;  %v1251_v35 = vsel %vm995_vm14, %v403_v27, %v1123_v30  ;;  %vm996_vm0 = vcmp.ge.f32.partialorder %v405_v33, 0.0  ;;  %v1124_v36 = vmul.f32 0.01, %v405_v33  ;;  %vm998_vm1 = vcmp.ge.f32.partialorder %v566_v34, 0.0 }
  0xfb   : > { %1379 = vst [vmem:[%s2063_s27 + $0x1c0] sm:$0xff] %v1251_v35  ;;  %v1253_v37 = vsel %vm997_vm15, %v564_v28, %v1125_v32  ;;  %v1126_v38 = vmul.f32 0.01, %v566_v34  ;;  %v409_v39 = vpop.f32.mrf.mxu0  ;;  %v570_v40 = vpop.f32.mrf.mxu1 }
  0xfc   : > { %1381 = vst [vmem:[%s2063_s27 + $0x1d0] sm:$0xff] %v1253_v37  ;;  %v1252_v41 = vsel %vm996_vm0, %v405_v33, %v1124_v36  ;;  %vm1003_vm2 = vcmp.ge.f32.partialorder %v409_v39, 0.0  ;;  %v1131_v42 = vmul.f32 0.01, %v409_v39  ;;  %vm1005_vm3 = vcmp.ge.f32.partialorder %v570_v40, 0.0 }
  0xfd   : > { %1380 = vst [vmem:[%s2063_s27 + $0x1c8] sm:$0xff] %v1252_v41  ;;  %v1254_v43 = vsel %vm998_vm1, %v566_v34, %v1126_v38  ;;  %v1133_v44 = vmul.f32 0.01, %v570_v40  ;;  %v411_v45 = vpop.f32.mrf.mxu0  ;;  %v572_v46 = vpop.f32.mrf.mxu1 }
  0xfe   : > { %1382 = vst [vmem:[%s2063_s27 + $0x1d8] sm:$0xff] %v1254_v43  ;;  %v1259_v47 = vsel %vm1003_vm2, %v409_v39, %v1131_v42  ;;  %vm1004_vm4 = vcmp.ge.f32.partialorder %v411_v45, 0.0  ;;  %v1132_v48 = vmul.f32 0.01, %v411_v45  ;;  %vm1006_vm5 = vcmp.ge.f32.partialorder %v572_v46, 0.0 }
  0xff   : > { %1387 = vst [vmem:[%s2063_s27 + $0x200] sm:$0xff] %v1259_v47  ;;  %v1261_v49 = vsel %vm1005_vm3, %v570_v40, %v1133_v44  ;;  %v1134_v50 = vmul.f32 0.01, %v572_v46  ;;  %v415_v51 = vpop.f32.mrf.mxu0  ;;  %v576_v52 = vpop.f32.mrf.mxu1 }
 0x100   : > { %1389 = vst [vmem:[%s2063_s27 + $0x210] sm:$0xff] %v1261_v49  ;;  %v1260_v53 = vsel %vm1004_vm4, %v411_v45, %v1132_v48  ;;  %vm1011_vm6 = vcmp.ge.f32.partialorder %v415_v51, 0.0  ;;  %v1139_v54 = vmul.f32 0.01, %v415_v51  ;;  %vm1013_vm7 = vcmp.ge.f32.partialorder %v576_v52, 0.0 }
 0x101   : > { %1388 = vst [vmem:[%s2063_s27 + $0x208] sm:$0xff] %v1260_v53  ;;  %v1262_v55 = vsel %vm1006_vm5, %v572_v46, %v1134_v50  ;;  %v1141_v56 = vmul.f32 0.01, %v576_v52  ;;  %v417_v57 = vpop.f32.mrf.mxu0  ;;  %v578_v58 = vpop.f32.mrf.mxu1 }
 0x102   : > { %1390 = vst [vmem:[%s2063_s27 + $0x218] sm:$0xff] %v1262_v55  ;;  %v1267_v59 = vsel %vm1011_vm6, %v415_v51, %v1139_v54  ;;  %vm1012_vm8 = vcmp.ge.f32.partialorder %v417_v57, 0.0  ;;  %v1140_v60 = vmul.f32 0.01, %v417_v57  ;;  %vm1014_vm9 = vcmp.ge.f32.partialorder %v578_v58, 0.0 }
 0x103   : > { %1395 = vst [vmem:[%s2063_s27 + $0x240] sm:$0xff] %v1267_v59  ;;  %v1269_v61 = vsel %vm1013_vm7, %v576_v52, %v1141_v56  ;;  %v1142_v62 = vmul.f32 0.01, %v578_v58  ;;  %v421_v63 = vpop.f32.mrf.mxu0  ;;  %v582_v0 = vpop.f32.mrf.mxu1 }
 0x104   : > { %1397 = vst [vmem:[%s2063_s27 + $0x250] sm:$0xff] %v1269_v61  ;;  %v1268_v1 = vsel %vm1012_vm8, %v417_v57, %v1140_v60  ;;  %vm1019_vm10 = vcmp.ge.f32.partialorder %v421_v63, 0.0  ;;  %v1147_v2 = vmul.f32 0.01, %v421_v63  ;;  %vm1021_vm11 = vcmp.ge.f32.partialorder %v582_v0, 0.0 }
 0x105   : > { %1396 = vst [vmem:[%s2063_s27 + $0x248] sm:$0xff] %v1268_v1  ;;  %v1270_v3 = vsel %vm1014_vm9, %v578_v58, %v1142_v62  ;;  %v1149_v4 = vmul.f32 0.01, %v582_v0  ;;  %v423_v5 = vpop.f32.mrf.mxu0  ;;  %v584_v6 = vpop.f32.mrf.mxu1 }
 0x106   : > { %1398 = vst [vmem:[%s2063_s27 + $0x258] sm:$0xff] %v1270_v3  ;;  %v1275_v7 = vsel %vm1019_vm10, %v421_v63, %v1147_v2  ;;  %vm1020_vm12 = vcmp.ge.f32.partialorder %v423_v5, 0.0  ;;  %v1148_v8 = vmul.f32 0.01, %v423_v5  ;;  %vm1022_vm13 = vcmp.ge.f32.partialorder %v584_v6, 0.0 }
 0x107   : > { %1403 = vst [vmem:[%s2063_s27 + $0x280] sm:$0xff] %v1275_v7  ;;  %v1277_v9 = vsel %vm1021_vm11, %v582_v0, %v1149_v4  ;;  %v1150_v10 = vmul.f32 0.01, %v584_v6  ;;  %v427_v11 = vpop.f32.mrf.mxu0  ;;  %v588_v12 = vpop.f32.mrf.mxu1 }
 0x108   : > { %1405 = vst [vmem:[%s2063_s27 + $0x290] sm:$0xff] %v1277_v9  ;;  %v1276_v13 = vsel %vm1020_vm12, %v423_v5, %v1148_v8  ;;  %vm1027_vm14 = vcmp.ge.f32.partialorder %v427_v11, 0.0  ;;  %v1155_v14 = vmul.f32 0.01, %v427_v11  ;;  %vm1029_vm15 = vcmp.ge.f32.partialorder %v588_v12, 0.0 }
 0x109   : > { %1404 = vst [vmem:[%s2063_s27 + $0x288] sm:$0xff] %v1276_v13  ;;  %v1278_v15 = vsel %vm1022_vm13, %v584_v6, %v1150_v10  ;;  %v1157_v16 = vmul.f32 0.01, %v588_v12  ;;  %v429_v17 = vpop.f32.mrf.mxu0  ;;  %v590_v18 = vpop.f32.mrf.mxu1 }
 0x10a   : > { %1406 = vst [vmem:[%s2063_s27 + $0x298] sm:$0xff] %v1278_v15  ;;  %v1283_v19 = vsel %vm1027_vm14, %v427_v11, %v1155_v14  ;;  %vm1028_vm0 = vcmp.ge.f32.partialorder %v429_v17, 0.0  ;;  %v1156_v20 = vmul.f32 0.01, %v429_v17  ;;  %vm1030_vm1 = vcmp.ge.f32.partialorder %v590_v18, 0.0 }
 0x10b   : > { %1411 = vst [vmem:[%s2063_s27 + $0x2c0] sm:$0xff] %v1283_v19  ;;  %v1285_v21 = vsel %vm1029_vm15, %v588_v12, %v1157_v16  ;;  %v1158_v22 = vmul.f32 0.01, %v590_v18  ;;  %v433_v23 = vpop.f32.mrf.mxu0  ;;  %v594_v24 = vpop.f32.mrf.mxu1 }
 0x10c   : > { %1413 = vst [vmem:[%s2063_s27 + $0x2d0] sm:$0xff] %v1285_v21  ;;  %v1284_v25 = vsel %vm1028_vm0, %v429_v17, %v1156_v20  ;;  %vm1035_vm2 = vcmp.ge.f32.partialorder %v433_v23, 0.0  ;;  %v1163_v26 = vmul.f32 0.01, %v433_v23  ;;  %vm1037_vm3 = vcmp.ge.f32.partialorder %v594_v24, 0.0 }
 0x10d   : > { %1412 = vst [vmem:[%s2063_s27 + $0x2c8] sm:$0xff] %v1284_v25  ;;  %v1286_v27 = vsel %vm1030_vm1, %v590_v18, %v1158_v22  ;;  %v1165_v28 = vmul.f32 0.01, %v594_v24  ;;  %v435_v29 = vpop.f32.mrf.mxu0  ;;  %v596_v30 = vpop.f32.mrf.mxu1 }
 0x10e   : > { %1414 = vst [vmem:[%s2063_s27 + $0x2d8] sm:$0xff] %v1286_v27  ;;  %v1291_v31 = vsel %vm1035_vm2, %v433_v23, %v1163_v26  ;;  %vm1036_vm4 = vcmp.ge.f32.partialorder %v435_v29, 0.0  ;;  %v1164_v32 = vmul.f32 0.01, %v435_v29  ;;  %vm1038_vm5 = vcmp.ge.f32.partialorder %v596_v30, 0.0 }
 0x10f   : > { %1419 = vst [vmem:[%s2063_s27 + $0x300] sm:$0xff] %v1291_v31  ;;  %v1293_v33 = vsel %vm1037_vm3, %v594_v24, %v1165_v28  ;;  %v1166_v34 = vmul.f32 0.01, %v596_v30  ;;  %v439_v35 = vpop.f32.mrf.mxu0  ;;  %v600_v36 = vpop.f32.mrf.mxu1 }
 0x110   : > { %1421 = vst [vmem:[%s2063_s27 + $0x310] sm:$0xff] %v1293_v33  ;;  %v1292_v37 = vsel %vm1036_vm4, %v435_v29, %v1164_v32  ;;  %vm1043_vm6 = vcmp.ge.f32.partialorder %v439_v35, 0.0  ;;  %v1171_v38 = vmul.f32 0.01, %v439_v35  ;;  %vm1045_vm7 = vcmp.ge.f32.partialorder %v600_v36, 0.0 }
 0x111   : > { %1420 = vst [vmem:[%s2063_s27 + $0x308] sm:$0xff] %v1292_v37  ;;  %v1294_v39 = vsel %vm1038_vm5, %v596_v30, %v1166_v34  ;;  %v1173_v40 = vmul.f32 0.01, %v600_v36  ;;  %v441_v41 = vpop.f32.mrf.mxu0  ;;  %v602_v42 = vpop.f32.mrf.mxu1 }
 0x112   : > { %1422 = vst [vmem:[%s2063_s27 + $0x318] sm:$0xff] %v1294_v39  ;;  %v1299_v43 = vsel %vm1043_vm6, %v439_v35, %v1171_v38  ;;  %vm1044_vm8 = vcmp.ge.f32.partialorder %v441_v41, 0.0  ;;  %v1172_v44 = vmul.f32 0.01, %v441_v41  ;;  %vm1046_vm9 = vcmp.ge.f32.partialorder %v602_v42, 0.0 }
 0x113   : > { %1427 = vst [vmem:[%s2063_s27 + $0x340] sm:$0xff] %v1299_v43  ;;  %v1301_v45 = vsel %vm1045_vm7, %v600_v36, %v1173_v40  ;;  %v1174_v46 = vmul.f32 0.01, %v602_v42  ;;  %v445_v47 = vpop.f32.mrf.mxu0  ;;  %v606_v48 = vpop.f32.mrf.mxu1 }
 0x114   : > { %1429 = vst [vmem:[%s2063_s27 + $0x350] sm:$0xff] %v1301_v45  ;;  %v1300_v49 = vsel %vm1044_vm8, %v441_v41, %v1172_v44  ;;  %vm1051_vm10 = vcmp.ge.f32.partialorder %v445_v47, 0.0  ;;  %v1179_v50 = vmul.f32 0.01, %v445_v47  ;;  %vm1053_vm11 = vcmp.ge.f32.partialorder %v606_v48, 0.0 }
 0x115   : > { %1428 = vst [vmem:[%s2063_s27 + $0x348] sm:$0xff] %v1300_v49  ;;  %v1302_v51 = vsel %vm1046_vm9, %v602_v42, %v1174_v46  ;;  %v1181_v52 = vmul.f32 0.01, %v606_v48  ;;  %v447_v53 = vpop.f32.mrf.mxu0  ;;  %v608_v54 = vpop.f32.mrf.mxu1 }
 0x116   : > { %1430 = vst [vmem:[%s2063_s27 + $0x358] sm:$0xff] %v1302_v51  ;;  %v1307_v55 = vsel %vm1051_vm10, %v445_v47, %v1179_v50  ;;  %vm1052_vm12 = vcmp.ge.f32.partialorder %v447_v53, 0.0  ;;  %v1180_v56 = vmul.f32 0.01, %v447_v53  ;;  %vm1054_vm13 = vcmp.ge.f32.partialorder %v608_v54, 0.0 }
 0x117   : > { %1435 = vst [vmem:[%s2063_s27 + $0x380] sm:$0xff] %v1307_v55  ;;  %v1309_v57 = vsel %vm1053_vm11, %v606_v48, %v1181_v52  ;;  %v1182_v58 = vmul.f32 0.01, %v608_v54  ;;  %v451_v59 = vpop.f32.mrf.mxu0  ;;  %v612_v60 = vpop.f32.mrf.mxu1 }
 0x118   : > { %1437 = vst [vmem:[%s2063_s27 + $0x390] sm:$0xff] %v1309_v57  ;;  %v1308_v61 = vsel %vm1052_vm12, %v447_v53, %v1180_v56  ;;  %vm1059_vm14 = vcmp.ge.f32.partialorder %v451_v59, 0.0  ;;  %v1187_v62 = vmul.f32 0.01, %v451_v59  ;;  %vm1061_vm15 = vcmp.ge.f32.partialorder %v612_v60, 0.0 }
 0x119   : > { %1436 = vst [vmem:[%s2063_s27 + $0x388] sm:$0xff] %v1308_v61  ;;  %v1310_v63 = vsel %vm1054_vm13, %v608_v54, %v1182_v58  ;;  %v1189_v0 = vmul.f32 0.01, %v612_v60  ;;  %v453_v1 = vpop.f32.mrf.mxu0  ;;  %v614_v2 = vpop.f32.mrf.mxu1 }
 0x11a   : > { %1438 = vst [vmem:[%s2063_s27 + $0x398] sm:$0xff] %v1310_v63  ;;  %v1315_v3 = vsel %vm1059_vm14, %v451_v59, %v1187_v62  ;;  %vm1060_vm0 = vcmp.ge.f32.partialorder %v453_v1, 0.0  ;;  %v1188_v4 = vmul.f32 0.01, %v453_v1  ;;  %vm1062_vm1 = vcmp.ge.f32.partialorder %v614_v2, 0.0 }
 0x11b   : > { %1443 = vst [vmem:[%s2063_s27 + $0x3c0] sm:$0xff] %v1315_v3  ;;  %v1317_v5 = vsel %vm1061_vm15, %v612_v60, %v1189_v0  ;;  %v1190_v6 = vmul.f32 0.01, %v614_v2  ;;  %v683_v7 = vpop.f32.mrf.mxu0  ;;  %v844_v8 = vpop.f32.mrf.mxu1 }
 0x11c   : > { %1445 = vst [vmem:[%s2063_s27 + $0x3d0] sm:$0xff] %v1317_v5  ;;  %v1316_v9 = vsel %vm1060_vm0, %v453_v1, %v1188_v4  ;;  %vm943_vm2 = vcmp.ge.f32.partialorder %v683_v7, 0.0  ;;  %v1071_v10 = vmul.f32 0.01, %v683_v7  ;;  %vm945_vm3 = vcmp.ge.f32.partialorder %v844_v8, 0.0 }
 0x11d   : > { %1444 = vst [vmem:[%s2063_s27 + $0x3c8] sm:$0xff] %v1316_v9  ;;  %v1318_v11 = vsel %vm1062_vm1, %v614_v2, %v1190_v6  ;;  %v1073_v12 = vmul.f32 0.01, %v844_v8  ;;  %v685_v13 = vpop.f32.mrf.mxu0  ;;  %v846_v14 = vpop.f32.mrf.mxu1 }
 0x11e   : > { %1446 = vst [vmem:[%s2063_s27 + $0x3d8] sm:$0xff] %v1318_v11  ;;  %v1199_v15 = vsel %vm943_vm2, %v683_v7, %v1071_v10  ;;  %vm944_vm4 = vcmp.ge.f32.partialorder %v685_v13, 0.0  ;;  %v1072_v16 = vmul.f32 0.01, %v685_v13  ;;  %vm946_vm5 = vcmp.ge.f32.partialorder %v846_v14, 0.0 }
 0x11f   : > { %1327 = vst [vmem:[%s2063_s27 + $0x20] sm:$0xff] %v1199_v15  ;;  %v1201_v17 = vsel %vm945_vm3, %v844_v8, %v1073_v12  ;;  %v1074_v18 = vmul.f32 0.01, %v846_v14  ;;  %v689_v19 = vpop.f32.mrf.mxu0  ;;  %v850_v20 = vpop.f32.mrf.mxu1 }
 0x120   : > { %1329 = vst [vmem:[%s2063_s27 + $0x30] sm:$0xff] %v1201_v17  ;;  %v1200_v21 = vsel %vm944_vm4, %v685_v13, %v1072_v16  ;;  %vm951_vm6 = vcmp.ge.f32.partialorder %v689_v19, 0.0  ;;  %v1079_v22 = vmul.f32 0.01, %v689_v19  ;;  %vm953_vm7 = vcmp.ge.f32.partialorder %v850_v20, 0.0 }
 0x121   : > { %1328 = vst [vmem:[%s2063_s27 + $0x28] sm:$0xff] %v1200_v21  ;;  %v1202_v23 = vsel %vm946_vm5, %v846_v14, %v1074_v18  ;;  %v1081_v24 = vmul.f32 0.01, %v850_v20  ;;  %v691_v25 = vpop.f32.mrf.mxu0  ;;  %v852_v26 = vpop.f32.mrf.mxu1 }
 0x122   : > { %1330 = vst [vmem:[%s2063_s27 + $0x38] sm:$0xff] %v1202_v23  ;;  %v1207_v27 = vsel %vm951_vm6, %v689_v19, %v1079_v22  ;;  %vm952_vm8 = vcmp.ge.f32.partialorder %v691_v25, 0.0  ;;  %v1080_v28 = vmul.f32 0.01, %v691_v25  ;;  %vm954_vm9 = vcmp.ge.f32.partialorder %v852_v26, 0.0 }
 0x123   : > { %1335 = vst [vmem:[%s2063_s27 + $0x60] sm:$0xff] %v1207_v27  ;;  %v1209_v29 = vsel %vm953_vm7, %v850_v20, %v1081_v24  ;;  %v1082_v30 = vmul.f32 0.01, %v852_v26  ;;  %v695_v31 = vpop.f32.mrf.mxu0  ;;  %v856_v32 = vpop.f32.mrf.mxu1 }
 0x124   : > { %1337 = vst [vmem:[%s2063_s27 + $0x70] sm:$0xff] %v1209_v29  ;;  %v1208_v33 = vsel %vm952_vm8, %v691_v25, %v1080_v28  ;;  %vm959_vm10 = vcmp.ge.f32.partialorder %v695_v31, 0.0  ;;  %v1087_v34 = vmul.f32 0.01, %v695_v31  ;;  %vm961_vm11 = vcmp.ge.f32.partialorder %v856_v32, 0.0 }
 0x125   : > { %1336 = vst [vmem:[%s2063_s27 + $0x68] sm:$0xff] %v1208_v33  ;;  %v1210_v35 = vsel %vm954_vm9, %v852_v26, %v1082_v30  ;;  %v1089_v36 = vmul.f32 0.01, %v856_v32  ;;  %v697_v37 = vpop.f32.mrf.mxu0  ;;  %v858_v38 = vpop.f32.mrf.mxu1 }
 0x126   : > { %1338 = vst [vmem:[%s2063_s27 + $0x78] sm:$0xff] %v1210_v35  ;;  %v1215_v39 = vsel %vm959_vm10, %v695_v31, %v1087_v34  ;;  %vm960_vm12 = vcmp.ge.f32.partialorder %v697_v37, 0.0  ;;  %v1088_v40 = vmul.f32 0.01, %v697_v37  ;;  %vm962_vm13 = vcmp.ge.f32.partialorder %v858_v38, 0.0 }
 0x127   : > { %1343 = vst [vmem:[%s2063_s27 + $0xa0] sm:$0xff] %v1215_v39  ;;  %v1217_v41 = vsel %vm961_vm11, %v856_v32, %v1089_v36  ;;  %v1090_v42 = vmul.f32 0.01, %v858_v38  ;;  %v701_v43 = vpop.f32.mrf.mxu0  ;;  %v862_v44 = vpop.f32.mrf.mxu1 }
 0x128   : > { %1345 = vst [vmem:[%s2063_s27 + $0xb0] sm:$0xff] %v1217_v41  ;;  %v1216_v45 = vsel %vm960_vm12, %v697_v37, %v1088_v40  ;;  %vm967_vm14 = vcmp.ge.f32.partialorder %v701_v43, 0.0  ;;  %v1095_v46 = vmul.f32 0.01, %v701_v43  ;;  %vm969_vm15 = vcmp.ge.f32.partialorder %v862_v44, 0.0 }
 0x129   : > { %1344 = vst [vmem:[%s2063_s27 + $0xa8] sm:$0xff] %v1216_v45  ;;  %v1218_v47 = vsel %vm962_vm13, %v858_v38, %v1090_v42  ;;  %v1097_v48 = vmul.f32 0.01, %v862_v44  ;;  %v703_v49 = vpop.f32.mrf.mxu0  ;;  %v864_v50 = vpop.f32.mrf.mxu1 }
 0x12a   : > { %1346 = vst [vmem:[%s2063_s27 + $0xb8] sm:$0xff] %v1218_v47  ;;  %v1223_v51 = vsel %vm967_vm14, %v701_v43, %v1095_v46  ;;  %vm968_vm0 = vcmp.ge.f32.partialorder %v703_v49, 0.0  ;;  %v1096_v52 = vmul.f32 0.01, %v703_v49  ;;  %vm970_vm1 = vcmp.ge.f32.partialorder %v864_v50, 0.0 }
 0x12b   : > { %1351 = vst [vmem:[%s2063_s27 + $0xe0] sm:$0xff] %v1223_v51  ;;  %v1225_v53 = vsel %vm969_vm15, %v862_v44, %v1097_v48  ;;  %v1098_v54 = vmul.f32 0.01, %v864_v50  ;;  %v707_v55 = vpop.f32.mrf.mxu0  ;;  %v868_v56 = vpop.f32.mrf.mxu1 }
 0x12c   : > { %1353 = vst [vmem:[%s2063_s27 + $0xf0] sm:$0xff] %v1225_v53  ;;  %v1224_v57 = vsel %vm968_vm0, %v703_v49, %v1096_v52  ;;  %vm975_vm2 = vcmp.ge.f32.partialorder %v707_v55, 0.0  ;;  %v1103_v58 = vmul.f32 0.01, %v707_v55  ;;  %vm977_vm3 = vcmp.ge.f32.partialorder %v868_v56, 0.0 }
 0x12d   : > { %1352 = vst [vmem:[%s2063_s27 + $0xe8] sm:$0xff] %v1224_v57  ;;  %v1226_v59 = vsel %vm970_vm1, %v864_v50, %v1098_v54  ;;  %v1105_v60 = vmul.f32 0.01, %v868_v56  ;;  %v709_v61 = vpop.f32.mrf.mxu0  ;;  %v870_v62 = vpop.f32.mrf.mxu1 }
 0x12e   : > { %1354 = vst [vmem:[%s2063_s27 + $0xf8] sm:$0xff] %v1226_v59  ;;  %v1231_v63 = vsel %vm975_vm2, %v707_v55, %v1103_v58  ;;  %vm976_vm4 = vcmp.ge.f32.partialorder %v709_v61, 0.0  ;;  %v1104_v0 = vmul.f32 0.01, %v709_v61  ;;  %vm978_vm5 = vcmp.ge.f32.partialorder %v870_v62, 0.0 }
 0x12f   : > { %1359 = vst [vmem:[%s2063_s27 + $0x120] sm:$0xff] %v1231_v63  ;;  %v1233_v1 = vsel %vm977_vm3, %v868_v56, %v1105_v60  ;;  %v1106_v2 = vmul.f32 0.01, %v870_v62  ;;  %v713_v3 = vpop.f32.mrf.mxu0  ;;  %v874_v4 = vpop.f32.mrf.mxu1 }
 0x130   : > { %1361 = vst [vmem:[%s2063_s27 + $0x130] sm:$0xff] %v1233_v1  ;;  %v1232_v5 = vsel %vm976_vm4, %v709_v61, %v1104_v0  ;;  %vm983_vm6 = vcmp.ge.f32.partialorder %v713_v3, 0.0  ;;  %v1111_v6 = vmul.f32 0.01, %v713_v3  ;;  %vm985_vm7 = vcmp.ge.f32.partialorder %v874_v4, 0.0 }
 0x131   : > { %1360 = vst [vmem:[%s2063_s27 + $0x128] sm:$0xff] %v1232_v5  ;;  %v1234_v7 = vsel %vm978_vm5, %v870_v62, %v1106_v2  ;;  %v1113_v8 = vmul.f32 0.01, %v874_v4  ;;  %v715_v9 = vpop.f32.mrf.mxu0  ;;  %v876_v10 = vpop.f32.mrf.mxu1 }
 0x132   : > { %1362 = vst [vmem:[%s2063_s27 + $0x138] sm:$0xff] %v1234_v7  ;;  %v1239_v11 = vsel %vm983_vm6, %v713_v3, %v1111_v6  ;;  %vm984_vm8 = vcmp.ge.f32.partialorder %v715_v9, 0.0  ;;  %v1112_v12 = vmul.f32 0.01, %v715_v9  ;;  %vm986_vm9 = vcmp.ge.f32.partialorder %v876_v10, 0.0 }
 0x133   : > { %1367 = vst [vmem:[%s2063_s27 + $0x160] sm:$0xff] %v1239_v11  ;;  %v1241_v13 = vsel %vm985_vm7, %v874_v4, %v1113_v8  ;;  %v1114_v14 = vmul.f32 0.01, %v876_v10  ;;  %v719_v15 = vpop.f32.mrf.mxu0  ;;  %v880_v16 = vpop.f32.mrf.mxu1 }
 0x134   : > { %1369 = vst [vmem:[%s2063_s27 + $0x170] sm:$0xff] %v1241_v13  ;;  %v1240_v17 = vsel %vm984_vm8, %v715_v9, %v1112_v12  ;;  %vm991_vm10 = vcmp.ge.f32.partialorder %v719_v15, 0.0  ;;  %v1119_v18 = vmul.f32 0.01, %v719_v15  ;;  %vm993_vm11 = vcmp.ge.f32.partialorder %v880_v16, 0.0 }
 0x135   : > { %1368 = vst [vmem:[%s2063_s27 + $0x168] sm:$0xff] %v1240_v17  ;;  %v1242_v19 = vsel %vm986_vm9, %v876_v10, %v1114_v14  ;;  %v1121_v20 = vmul.f32 0.01, %v880_v16  ;;  %v721_v21 = vpop.f32.mrf.mxu0  ;;  %v882_v22 = vpop.f32.mrf.mxu1 }
 0x136   : > { %1370 = vst [vmem:[%s2063_s27 + $0x178] sm:$0xff] %v1242_v19  ;;  %v1247_v23 = vsel %vm991_vm10, %v719_v15, %v1119_v18  ;;  %vm992_vm12 = vcmp.ge.f32.partialorder %v721_v21, 0.0  ;;  %v1120_v24 = vmul.f32 0.01, %v721_v21  ;;  %vm994_vm13 = vcmp.ge.f32.partialorder %v882_v22, 0.0 }
 0x137   : > { %1375 = vst [vmem:[%s2063_s27 + $0x1a0] sm:$0xff] %v1247_v23  ;;  %v1249_v25 = vsel %vm993_vm11, %v880_v16, %v1121_v20  ;;  %v1122_v26 = vmul.f32 0.01, %v882_v22  ;;  %v725_v27 = vpop.f32.mrf.mxu0  ;;  %v886_v28 = vpop.f32.mrf.mxu1 }
 0x138   : > { %1377 = vst [vmem:[%s2063_s27 + $0x1b0] sm:$0xff] %v1249_v25  ;;  %v1248_v29 = vsel %vm992_vm12, %v721_v21, %v1120_v24  ;;  %vm999_vm14 = vcmp.ge.f32.partialorder %v725_v27, 0.0  ;;  %v1127_v30 = vmul.f32 0.01, %v725_v27  ;;  %vm1001_vm15 = vcmp.ge.f32.partialorder %v886_v28, 0.0 }
 0x139   : > { %1376 = vst [vmem:[%s2063_s27 + $0x1a8] sm:$0xff] %v1248_v29  ;;  %v1250_v31 = vsel %vm994_vm13, %v882_v22, %v1122_v26  ;;  %v1129_v32 = vmul.f32 0.01, %v886_v28  ;;  %v727_v33 = vpop.f32.mrf.mxu0  ;;  %v888_v34 = vpop.f32.mrf.mxu1 }
 0x13a   : > { %1378 = vst [vmem:[%s2063_s27 + $0x1b8] sm:$0xff] %v1250_v31  ;;  %v1255_v35 = vsel %vm999_vm14, %v725_v27, %v1127_v30  ;;  %vm1000_vm0 = vcmp.ge.f32.partialorder %v727_v33, 0.0  ;;  %v1128_v36 = vmul.f32 0.01, %v727_v33  ;;  %vm1002_vm1 = vcmp.ge.f32.partialorder %v888_v34, 0.0 }
 0x13b   : > { %1383 = vst [vmem:[%s2063_s27 + $0x1e0] sm:$0xff] %v1255_v35  ;;  %v1257_v37 = vsel %vm1001_vm15, %v886_v28, %v1129_v32  ;;  %v1130_v38 = vmul.f32 0.01, %v888_v34  ;;  %v731_v39 = vpop.f32.mrf.mxu0  ;;  %v892_v40 = vpop.f32.mrf.mxu1 }
 0x13c   : > { %1385 = vst [vmem:[%s2063_s27 + $0x1f0] sm:$0xff] %v1257_v37  ;;  %v1256_v41 = vsel %vm1000_vm0, %v727_v33, %v1128_v36  ;;  %vm1007_vm2 = vcmp.ge.f32.partialorder %v731_v39, 0.0  ;;  %v1135_v42 = vmul.f32 0.01, %v731_v39  ;;  %vm1009_vm3 = vcmp.ge.f32.partialorder %v892_v40, 0.0 }
 0x13d   : > { %1384 = vst [vmem:[%s2063_s27 + $0x1e8] sm:$0xff] %v1256_v41  ;;  %v1258_v43 = vsel %vm1002_vm1, %v888_v34, %v1130_v38  ;;  %v1137_v44 = vmul.f32 0.01, %v892_v40  ;;  %v733_v45 = vpop.f32.mrf.mxu0  ;;  %v894_v46 = vpop.f32.mrf.mxu1 }
 0x13e   : > { %1386 = vst [vmem:[%s2063_s27 + $0x1f8] sm:$0xff] %v1258_v43  ;;  %v1263_v47 = vsel %vm1007_vm2, %v731_v39, %v1135_v42  ;;  %vm1008_vm4 = vcmp.ge.f32.partialorder %v733_v45, 0.0  ;;  %v1136_v48 = vmul.f32 0.01, %v733_v45  ;;  %vm1010_vm5 = vcmp.ge.f32.partialorder %v894_v46, 0.0 }
 0x13f   : > { %1391 = vst [vmem:[%s2063_s27 + $0x220] sm:$0xff] %v1263_v47  ;;  %v1265_v49 = vsel %vm1009_vm3, %v892_v40, %v1137_v44  ;;  %v1138_v50 = vmul.f32 0.01, %v894_v46  ;;  %v737_v51 = vpop.f32.mrf.mxu0  ;;  %v898_v52 = vpop.f32.mrf.mxu1 }
 0x140   : > { %1393 = vst [vmem:[%s2063_s27 + $0x230] sm:$0xff] %v1265_v49  ;;  %v1264_v53 = vsel %vm1008_vm4, %v733_v45, %v1136_v48  ;;  %vm1015_vm6 = vcmp.ge.f32.partialorder %v737_v51, 0.0  ;;  %v1143_v54 = vmul.f32 0.01, %v737_v51  ;;  %vm1017_vm7 = vcmp.ge.f32.partialorder %v898_v52, 0.0 }
 0x141   : > { %1392 = vst [vmem:[%s2063_s27 + $0x228] sm:$0xff] %v1264_v53  ;;  %v1266_v55 = vsel %vm1010_vm5, %v894_v46, %v1138_v50  ;;  %v1145_v56 = vmul.f32 0.01, %v898_v52  ;;  %v739_v57 = vpop.f32.mrf.mxu0  ;;  %v900_v58 = vpop.f32.mrf.mxu1 }
 0x142   : > { %1394 = vst [vmem:[%s2063_s27 + $0x238] sm:$0xff] %v1266_v55  ;;  %v1271_v59 = vsel %vm1015_vm6, %v737_v51, %v1143_v54  ;;  %vm1016_vm8 = vcmp.ge.f32.partialorder %v739_v57, 0.0  ;;  %v1144_v60 = vmul.f32 0.01, %v739_v57  ;;  %vm1018_vm9 = vcmp.ge.f32.partialorder %v900_v58, 0.0 }
 0x143   : > { %1399 = vst [vmem:[%s2063_s27 + $0x260] sm:$0xff] %v1271_v59  ;;  %v1273_v61 = vsel %vm1017_vm7, %v898_v52, %v1145_v56  ;;  %v1146_v62 = vmul.f32 0.01, %v900_v58  ;;  %v743_v63 = vpop.f32.mrf.mxu0  ;;  %v904_v0 = vpop.f32.mrf.mxu1 }
 0x144   : > { %1401 = vst [vmem:[%s2063_s27 + $0x270] sm:$0xff] %v1273_v61  ;;  %v1272_v1 = vsel %vm1016_vm8, %v739_v57, %v1144_v60  ;;  %vm1023_vm10 = vcmp.ge.f32.partialorder %v743_v63, 0.0  ;;  %v1151_v2 = vmul.f32 0.01, %v743_v63  ;;  %vm1025_vm11 = vcmp.ge.f32.partialorder %v904_v0, 0.0 }
 0x145   : > { %1400 = vst [vmem:[%s2063_s27 + $0x268] sm:$0xff] %v1272_v1  ;;  %v1274_v3 = vsel %vm1018_vm9, %v900_v58, %v1146_v62  ;;  %v1153_v4 = vmul.f32 0.01, %v904_v0  ;;  %v745_v5 = vpop.f32.mrf.mxu0  ;;  %v906_v6 = vpop.f32.mrf.mxu1 }
 0x146   : > { %1402 = vst [vmem:[%s2063_s27 + $0x278] sm:$0xff] %v1274_v3  ;;  %v1279_v7 = vsel %vm1023_vm10, %v743_v63, %v1151_v2  ;;  %vm1024_vm12 = vcmp.ge.f32.partialorder %v745_v5, 0.0  ;;  %v1152_v8 = vmul.f32 0.01, %v745_v5  ;;  %vm1026_vm13 = vcmp.ge.f32.partialorder %v906_v6, 0.0 }
 0x147   : > { %1407 = vst [vmem:[%s2063_s27 + $0x2a0] sm:$0xff] %v1279_v7  ;;  %v1281_v9 = vsel %vm1025_vm11, %v904_v0, %v1153_v4  ;;  %v1154_v10 = vmul.f32 0.01, %v906_v6  ;;  %v749_v11 = vpop.f32.mrf.mxu0  ;;  %v910_v12 = vpop.f32.mrf.mxu1 }
 0x148   : > { %1409 = vst [vmem:[%s2063_s27 + $0x2b0] sm:$0xff] %v1281_v9  ;;  %v1280_v13 = vsel %vm1024_vm12, %v745_v5, %v1152_v8  ;;  %vm1031_vm14 = vcmp.ge.f32.partialorder %v749_v11, 0.0  ;;  %v1159_v14 = vmul.f32 0.01, %v749_v11  ;;  %vm1033_vm15 = vcmp.ge.f32.partialorder %v910_v12, 0.0 }
 0x149   : > { %1408 = vst [vmem:[%s2063_s27 + $0x2a8] sm:$0xff] %v1280_v13  ;;  %v1282_v15 = vsel %vm1026_vm13, %v906_v6, %v1154_v10  ;;  %v1161_v16 = vmul.f32 0.01, %v910_v12  ;;  %v751_v17 = vpop.f32.mrf.mxu0  ;;  %v912_v18 = vpop.f32.mrf.mxu1 }
 0x14a   : > { %1410 = vst [vmem:[%s2063_s27 + $0x2b8] sm:$0xff] %v1282_v15  ;;  %v1287_v19 = vsel %vm1031_vm14, %v749_v11, %v1159_v14  ;;  %vm1032_vm0 = vcmp.ge.f32.partialorder %v751_v17, 0.0  ;;  %v1160_v20 = vmul.f32 0.01, %v751_v17  ;;  %vm1034_vm1 = vcmp.ge.f32.partialorder %v912_v18, 0.0 }
 0x14b   : > { %1415 = vst [vmem:[%s2063_s27 + $0x2e0] sm:$0xff] %v1287_v19  ;;  %v1289_v21 = vsel %vm1033_vm15, %v910_v12, %v1161_v16  ;;  %v1162_v22 = vmul.f32 0.01, %v912_v18  ;;  %v755_v23 = vpop.f32.mrf.mxu0  ;;  %v916_v24 = vpop.f32.mrf.mxu1 }
 0x14c   : > { %1417 = vst [vmem:[%s2063_s27 + $0x2f0] sm:$0xff] %v1289_v21  ;;  %v1288_v25 = vsel %vm1032_vm0, %v751_v17, %v1160_v20  ;;  %vm1039_vm2 = vcmp.ge.f32.partialorder %v755_v23, 0.0  ;;  %v1167_v26 = vmul.f32 0.01, %v755_v23  ;;  %vm1041_vm3 = vcmp.ge.f32.partialorder %v916_v24, 0.0 }
 0x14d   : > { %1416 = vst [vmem:[%s2063_s27 + $0x2e8] sm:$0xff] %v1288_v25  ;;  %v1290_v27 = vsel %vm1034_vm1, %v912_v18, %v1162_v22  ;;  %v1169_v28 = vmul.f32 0.01, %v916_v24  ;;  %v757_v29 = vpop.f32.mrf.mxu0  ;;  %v918_v30 = vpop.f32.mrf.mxu1 }
 0x14e   : > { %1418 = vst [vmem:[%s2063_s27 + $0x2f8] sm:$0xff] %v1290_v27  ;;  %v1295_v31 = vsel %vm1039_vm2, %v755_v23, %v1167_v26  ;;  %vm1040_vm4 = vcmp.ge.f32.partialorder %v757_v29, 0.0  ;;  %v1168_v32 = vmul.f32 0.01, %v757_v29  ;;  %vm1042_vm5 = vcmp.ge.f32.partialorder %v918_v30, 0.0 }
 0x14f   : > { %1423 = vst [vmem:[%s2063_s27 + $0x320] sm:$0xff] %v1295_v31  ;;  %v1297_v33 = vsel %vm1041_vm3, %v916_v24, %v1169_v28  ;;  %v1170_v34 = vmul.f32 0.01, %v918_v30  ;;  %v761_v35 = vpop.f32.mrf.mxu0  ;;  %v922_v36 = vpop.f32.mrf.mxu1 }
 0x150   : > { %1425 = vst [vmem:[%s2063_s27 + $0x330] sm:$0xff] %v1297_v33  ;;  %v1296_v37 = vsel %vm1040_vm4, %v757_v29, %v1168_v32  ;;  %vm1047_vm6 = vcmp.ge.f32.partialorder %v761_v35, 0.0  ;;  %v1175_v38 = vmul.f32 0.01, %v761_v35  ;;  %vm1049_vm7 = vcmp.ge.f32.partialorder %v922_v36, 0.0 }
 0x151   : > { %1424 = vst [vmem:[%s2063_s27 + $0x328] sm:$0xff] %v1296_v37  ;;  %v1298_v39 = vsel %vm1042_vm5, %v918_v30, %v1170_v34  ;;  %v1177_v40 = vmul.f32 0.01, %v922_v36  ;;  %v763_v41 = vpop.f32.mrf.mxu0  ;;  %v924_v42 = vpop.f32.mrf.mxu1 }
 0x152   : > { %1426 = vst [vmem:[%s2063_s27 + $0x338] sm:$0xff] %v1298_v39  ;;  %v1303_v43 = vsel %vm1047_vm6, %v761_v35, %v1175_v38  ;;  %vm1048_vm8 = vcmp.ge.f32.partialorder %v763_v41, 0.0  ;;  %v1176_v44 = vmul.f32 0.01, %v763_v41  ;;  %vm1050_vm9 = vcmp.ge.f32.partialorder %v924_v42, 0.0 }
 0x153   : > { %1431 = vst [vmem:[%s2063_s27 + $0x360] sm:$0xff] %v1303_v43  ;;  %v1305_v45 = vsel %vm1049_vm7, %v922_v36, %v1177_v40  ;;  %v1178_v46 = vmul.f32 0.01, %v924_v42  ;;  %v767_v47 = vpop.f32.mrf.mxu0  ;;  %v928_v48 = vpop.f32.mrf.mxu1 }
 0x154   : > { %1433 = vst [vmem:[%s2063_s27 + $0x370] sm:$0xff] %v1305_v45  ;;  %v1304_v49 = vsel %vm1048_vm8, %v763_v41, %v1176_v44  ;;  %vm1055_vm10 = vcmp.ge.f32.partialorder %v767_v47, 0.0  ;;  %v1183_v50 = vmul.f32 0.01, %v767_v47  ;;  %vm1057_vm11 = vcmp.ge.f32.partialorder %v928_v48, 0.0 }
 0x155   : > { %1432 = vst [vmem:[%s2063_s27 + $0x368] sm:$0xff] %v1304_v49  ;;  %v1306_v51 = vsel %vm1050_vm9, %v924_v42, %v1178_v46  ;;  %v1185_v52 = vmul.f32 0.01, %v928_v48  ;;  %v769_v53 = vpop.f32.mrf.mxu0  ;;  %v930_v54 = vpop.f32.mrf.mxu1 }
 0x156   : > { %1434 = vst [vmem:[%s2063_s27 + $0x378] sm:$0xff] %v1306_v51  ;;  %v1311_v55 = vsel %vm1055_vm10, %v767_v47, %v1183_v50  ;;  %vm1056_vm12 = vcmp.ge.f32.partialorder %v769_v53, 0.0  ;;  %v1184_v56 = vmul.f32 0.01, %v769_v53  ;;  %vm1058_vm13 = vcmp.ge.f32.partialorder %v930_v54, 0.0 }
 0x157   : > { %1439 = vst [vmem:[%s2063_s27 + $0x3a0] sm:$0xff] %v1311_v55  ;;  %v1313_v57 = vsel %vm1057_vm11, %v928_v48, %v1185_v52  ;;  %v1186_v58 = vmul.f32 0.01, %v930_v54  ;;  %v773_v59 = vpop.f32.mrf.mxu0  ;;  %v934_v60 = vpop.f32.mrf.mxu1 }
 0x158   : > { %1441 = vst [vmem:[%s2063_s27 + $0x3b0] sm:$0xff] %v1313_v57  ;;  %v1312_v61 = vsel %vm1056_vm12, %v769_v53, %v1184_v56  ;;  %vm1063_vm14 = vcmp.ge.f32.partialorder %v773_v59, 0.0  ;;  %v1191_v62 = vmul.f32 0.01, %v773_v59  ;;  %vm1065_vm15 = vcmp.ge.f32.partialorder %v934_v60, 0.0 }
 0x159   : > { %1440 = vst [vmem:[%s2063_s27 + $0x3a8] sm:$0xff] %v1312_v61  ;;  %v1314_v63 = vsel %vm1058_vm13, %v930_v54, %v1186_v58  ;;  %v1193_v0 = vmul.f32 0.01, %v934_v60  ;;  %v775_v1 = vpop.f32.mrf.mxu0  ;;  %v936_v2 = vpop.f32.mrf.mxu1 }
 0x15a   : > { %1442 = vst [vmem:[%s2063_s27 + $0x3b8] sm:$0xff] %v1314_v63  ;;  %v1319_v3 = vsel %vm1063_vm14, %v773_v59, %v1191_v62  ;;  %vm1064_vm0 = vcmp.ge.f32.partialorder %v775_v1, 0.0  ;;  %v1192_v4 = vmul.f32 0.01, %v775_v1  ;;  %vm1066_vm1 = vcmp.ge.f32.partialorder %v936_v2, 0.0 }
 0x15b   : > { %1447 = vst [vmem:[%s2063_s27 + $0x3e0] sm:$0xff] %v1319_v3  ;;  %v1321_v5 = vsel %vm1065_vm15, %v934_v60, %v1193_v0  ;;  %v1194_v6 = vmul.f32 0.01, %v936_v2 }
 0x15c   : > { %1449 = vst [vmem:[%s2063_s27 + $0x3f0] sm:$0xff] %v1321_v5  ;;  %v1320_v7 = vsel %vm1064_vm0, %v775_v1, %v1192_v4 }
 0x15d   : > { %1448 = vst [vmem:[%s2063_s27 + $0x3e8] sm:$0xff] %v1320_v7  ;;  %v1322_v8 = vsel %vm1066_vm1, %v936_v2, %v1194_v6 }
 0x15e   : > { %1450 = vst [vmem:[%s2063_s27 + $0x3f8] sm:$0xff] %v1322_v8 }
 0x15f PF: > { %s12_s9 = sadd.s32 1, %s1609_s9  }
 0x160   : > { %p9_p4 = scmp.ge.s32.totalorder %s12_s9, 4  }
 0x162   :  { %11 = sbr.rel (!%p9_p4) target bundleno = 1 (0x1), region = 58 }

</bundles_post_ra>
